<compile_context>
chip_gen: v6e
topology: v6e:2x2x1
jax: 0.10.0
libtpu: 0.0.40
codegen_flags: <defaults>
</compile_context>

<pallas_src>
import functools

import jax
import jax.numpy as jnp
from jax.experimental import pallas as pl
from jax.experimental.pallas import tpu as pltpu


def _round_up(x, m):
    return (x + m - 1) // m * m


# ---------------------------------------------------------------------------
# Capability probe: is pipeline_mode=pl.Buffered(1) accepted by this build?
# (Single-buffering the grid-invariant weight/bias halves their VMEM footprint
#  at zero cost; fall back to default double-buffering if unsupported.)
# ---------------------------------------------------------------------------
def _probe_single_buffering():
    try:
        spec = pl.BlockSpec((8, 128), lambda i: (0, 0), pipeline_mode=pl.Buffered(1))

        def _kernel(x_ref, o_ref):
            o_ref[...] = x_ref[...] + 1.0

        x0 = jnp.arange(8 * 128, dtype=jnp.float32).reshape(8, 128)
        fn = pl.pallas_call(
            _kernel,
            out_shape=jax.ShapeDtypeStruct((8, 128), jnp.float32),
            grid=(1,),
            in_specs=[spec],
            out_specs=pl.BlockSpec((8, 128), lambda i: (0, 0)),
        )
        y0 = jax.block_until_ready(fn(x0))
        return bool(jnp.allclose(y0, x0 + 1.0))
    except Exception:
        return False


_SINGLE_BUFFER_OK = _probe_single_buffering()


def _resident_spec(block_shape, index_map):
    """BlockSpec for an operand whose block never changes across the grid."""
    if _SINGLE_BUFFER_OK:
        return pl.BlockSpec(block_shape, index_map, pipeline_mode=pl.Buffered(1))
    return pl.BlockSpec(block_shape, index_map)


# ---------------------------------------------------------------------------
# Kernels
# ---------------------------------------------------------------------------
def _epilogue(y, b, out_dtype):
    y = y + b.astype(jnp.float32)
    # LeakyReLU(0.1): max(y, 0.1*y) == where(y >= 0, y, 0.1*y) for slope in (0,1)
    y = jnp.maximum(y, 0.1 * y)
    # l2norm along last dim: y / (||y||_2 + eps). Any padded latent columns are
    # exactly zero (zero weight cols + zero bias -> LeakyReLU(0)=0), so the norm
    # is exact. The norm vector is only (TM, 1); exact reciprocal keeps the
    # 1e-5 match with the reference (approx=True would not).
    norm = jnp.sqrt(jnp.sum(y * y, axis=-1, keepdims=True)) + 1e-8
    inv = pl.reciprocal(norm, approx=False)
    return (y * inv).astype(out_dtype)


def _precomp_kernel(x_ref, w_ref, b_ref, o_ref, *, bf16_matmul):
    # x_ref: (TM, img_dim), w_ref: (img_dim, latent_out), b_ref: (1, latent_out)
    x = x_ref[...]
    w = w_ref[...]
    if bf16_matmul:
        x = x.astype(jnp.bfloat16)
        w = w.astype(jnp.bfloat16)
    y = jnp.dot(x, w, preferred_element_type=jnp.float32)
    o_ref[...] = _epilogue(y, b_ref[...], o_ref.dtype)


def _precomp_kernel_ktiled(x_ref, w_ref, b_ref, o_ref, acc_ref, *, bf16_matmul):
    # grid = (rows, K // tk); K axis is last and marked "arbitrary".
    k = pl.program_id(1)

    @pl.when(k == 0)
    def _init():
        acc_ref[...] = jnp.zeros_like(acc_ref)

    x = x_ref[...]
    w = w_ref[...]
    if bf16_matmul:
        x = x.astype(jnp.bfloat16)
        w = w.astype(jnp.bfloat16)
    acc_ref[...] += jnp.dot(x, w, preferred_element_type=jnp.float32)

    @pl.when(k == pl.num_programs(1) - 1)
    def _finalize():
        o_ref[...] = _epilogue(acc_ref[...], b_ref[...], o_ref.dtype)


# ---------------------------------------------------------------------------
# One-time parameter preparation (hoisted out of the per-call path).
# ---------------------------------------------------------------------------
def prepare_precomp_params(weight, bias):
    """weight: (latent, img_dim) torch layout; bias: (latent,).

    Returns (w_t, b2d) where w_t is (img_dim, latent_out) and b2d is
    (1, latent_out). latent_out == latent when latent < 128 (unpadded, masked
    stores cost less than 4x HBM writes for tiny latents); otherwise latent is
    zero-padded up to a multiple of 128 for unmasked lane-dense stores.
    """
    latent, _ = weight.shape
    latent_out = latent if latent < 128 else _round_up(latent, 128)
    w_t = weight.T
    b = bias
    if latent_out != latent:
        w_t = jnp.pad(w_t, ((0, 0), (0, latent_out - latent)))
        b = jnp.pad(bias, (0, latent_out - latent))
    return w_t, b.reshape(1, latent_out)


# ---------------------------------------------------------------------------
# Forward pass
# ---------------------------------------------------------------------------
@functools.partial(
    jax.jit,
    static_argnames=("latent", "row_tile", "bf16_matmul", "force_k_tiling"),
)
def simple_precomp_prepared(images, w_t, b2d, *, latent, row_tile=None,
                            bf16_matmul=False, force_k_tiling=False):
    """images: (..., img_dim); w_t/b2d from prepare_precomp_params."""
    img_dim = images.shape[-1]
    latent_out = w_t.shape[-1]
    lead_shape = images.shape[:-1]

    x = images.reshape(-1, img_dim)
    n_rows = x.shape[0]
    out_dtype = images.dtype
    isz_x = x.dtype.itemsize
    isz_w = w_t.dtype.itemsize
    isz_o = jnp.dtype(out_dtype).itemsize

    # Generation-aware VMEM budget (v5e/v6e: 128 MiB, v7x: 64 MiB per TC).
    try:
        vmem_cap = int(pltpu.get_tpu_info().vmem_capacity_bytes)
    except Exception:
        vmem_cap = 64 * 1024 * 1024
    vmem_ceiling = (vmem_cap * 7) // 8  # ~56 MiB on v7x, ~112 MiB on 128-MiB parts

    w_bufs = 1 if _SINGLE_BUFFER_OK else 2

    # K (contraction) tiling: only when the resident weight would eat too much
    # VMEM (matters on v7x) or when forced; requires img_dim % 128 == 0.
    weight_vmem = w_bufs * img_dim * latent_out * isz_w
    k_tile = None
    if (force_k_tiling or weight_vmem > vmem_ceiling // 3) and img_dim % 128 == 0 and img_dim > 128:
        for cand in (512, 256, 128):
            if img_dim % cand == 0 and cand < img_dim:
                k_tile = cand
                break
    # TODO(synk): if img_dim is not a multiple of 128 and the weight still does
    # not fit, a zero-padded K axis would be needed; not required for typical
    # precomputed-feature dims (powers of two).

    # Row tiling (no input padding; the trailing partial block's stores are
    # masked and rows never interact through the row-wise l2norm).
    if row_tile is None:
        row_tile = 512 if vmem_cap > 96 * 1024 * 1024 else 256
    row_tile = _round_up(max(row_tile, 8), 8)
    row_tile_eff = min(row_tile, _round_up(max(n_rows, 1), 8))
    if n_rows > 8:
        # Keep >= 2 row-grid steps so v7x's two TensorCores both get work.
        row_tile_eff = min(row_tile_eff, _round_up(-(-n_rows // 2), 8))
    rows_grid = pl.cdiv(n_rows, row_tile_eff)

    # Advisory cost estimate so XLA schedules surrounding ops sensibly.
    cost = pl.CostEstimate(
        flops=2 * n_rows * img_dim * latent_out,
        transcendentals=2 * n_rows,
        bytes_accessed=(n_rows * img_dim * isz_x
                        + img_dim * latent_out * isz_w
                        + n_rows * latent_out * isz_o),
    )

    if k_tile is None:
        kernel = functools.partial(_precomp_kernel, bf16_matmul=bf16_matmul)
        grid = (rows_grid,)
        dims = ("parallel",)
        in_specs = [
            pl.BlockSpec((row_tile_eff, img_dim), lambda i: (i, 0)),
            _resident_spec((img_dim, latent_out), lambda i: (0, 0)),
            _resident_spec((1, latent_out), lambda i: (0, 0)),
        ]
        out_specs = pl.BlockSpec((row_tile_eff, latent_out), lambda i: (i, 0))
        scratch = ()
        vmem_need = (2 * row_tile_eff * img_dim * isz_x
                     + w_bufs * img_dim * latent_out * isz_w
                     + w_bufs * latent_out * isz_w
                     + 2 * row_tile_eff * latent_out * isz_o)
    else:
        kernel = functools.partial(_precomp_kernel_ktiled, bf16_matmul=bf16_matmul)
        grid = (rows_grid, img_dim // k_tile)
        dims = ("parallel", "arbitrary")
        in_specs = [
            pl.BlockSpec((row_tile_eff, k_tile), lambda i, k: (i, k)),
            pl.BlockSpec((k_tile, latent_out), lambda i, k: (k, 0)),
            _resident_spec((1, latent_out), lambda i, k: (0, 0)),
        ]
        out_specs = pl.BlockSpec((row_tile_eff, latent_out), lambda i, k: (i, 0))
        scratch = (pltpu.VMEM((row_tile_eff, latent_out), jnp.float32),)
        vmem_need = (2 * row_tile_eff * k_tile * isz_x
                     + 2 * k_tile * latent_out * isz_w
                     + w_bufs * latent_out * isz_w
                     + 2 * row_tile_eff * latent_out * isz_o
                     + row_tile_eff * latent_out * 4)

    vmem_limit = int(min(max(2 * vmem_need, 32 * 1024 * 1024), vmem_ceiling))

    out = pl.pallas_call(
        kernel,
        out_shape=jax.ShapeDtypeStruct((n_rows, latent_out), out_dtype),
        grid_spec=pltpu.PrefetchScalarGridSpec(
            num_scalar_prefetch=0,
            grid=grid,
            in_specs=in_specs,
            out_specs=out_specs,
            scratch_shapes=scratch,
        ),
        compiler_params=pltpu.CompilerParams(
            dimension_semantics=dims,
            vmem_limit_bytes=vmem_limit,
        ),
        cost_estimate=cost,
    )(x, w_t, b2d)

    if latent_out != latent:
        out = out[:, :latent]
    return out.reshape(*lead_shape, latent)


def simple_precomp(images, weight, bias, **kwargs):
    """Convenience wrapper (for repeated inference, hoist prepare_precomp_params)."""
    w_t, b2d = prepare_precomp_params(weight, bias)
    return simple_precomp_prepared(images, w_t, b2d, latent=weight.shape[0], **kwargs)


def _reference(images, weight, bias):
    y = images.astype(jnp.float32) @ weight.T.astype(jnp.float32) + bias
    y = jnp.where(y >= 0, y, 0.1 * y)
    norm = jnp.sqrt(jnp.sum(y * y, axis=-1, keepdims=True)) + 1e-8
    return y / norm


if __name__ == "__main__":
    # --- Test 1: small shapes consistent with the module (unpadded latent path)
    batch, n_regions, img_dim, latent_size = 2, 8, 32, 32
    key = jax.random.PRNGKey(0)
    k_img, k_w = jax.random.split(key)

    images = jax.random.normal(k_img, (batch, n_regions, img_dim), dtype=jnp.float32)
    # Deterministic Xavier-uniform init (matches init_weights): U(-r, r), bias = 0.
    r = jnp.sqrt(6.0) / jnp.sqrt(float(img_dim + latent_size))
    weight = jax.random.uniform(k_w, (latent_size, img_dim),
                                minval=-r, maxval=r, dtype=jnp.float32)
    bias = jnp.zeros((latent_size,), dtype=jnp.float32)

    w_t, b2d = prepare_precomp_params(weight, bias)      # hoisted one-time prep
    out = simple_precomp_prepared(images, w_t, b2d, latent=latent_size)
    jax.block_until_ready(out)

    ref = _reference(images, weight, bias)
    assert out.shape == (batch, n_regions, latent_size)
    assert jnp.allclose(out, ref, atol=1e-5, rtol=1e-5), "mismatch vs reference (test 1)"

    # --- Test 2: exercise the K-tiled accumulator path + lane-padded latent.
    img_dim2, latent2 = 256, 160
    k_img2, k_w2 = jax.random.split(jax.random.PRNGKey(1))
    images2 = jax.random.normal(k_img2, (3, 5, img_dim2), dtype=jnp.float32)
    r2 = jnp.sqrt(6.0) / jnp.sqrt(float(img_dim2 + latent2))
    weight2 = jax.random.uniform(k_w2, (latent2, img_dim2),
                                 minval=-r2, maxval=r2, dtype=jnp.float32)
    bias2 = jnp.full((latent2,), 0.05, dtype=jnp.float32)

    w_t2, b2d2 = prepare_precomp_params(weight2, bias2)
    out2_k = simple_precomp_prepared(images2, w_t2, b2d2, latent=latent2,
                                     force_k_tiling=True)
    out2_s = simple_precomp_prepared(images2, w_t2, b2d2, latent=latent2)
    jax.block_until_ready((out2_k, out2_s))

    ref2 = _reference(images2, weight2, bias2)
    assert out2_k.shape == (3, 5, latent2)
    assert jnp.allclose(out2_k, out2_s, atol=1e-5, rtol=1e-5), "K-tiled != single-K"
    assert jnp.allclose(out2_s, ref2, atol=1e-4, rtol=1e-4), "mismatch vs reference (test 2)"

    print("KERNEL_OK")
</pallas_src>

<mosaic_0001>
module attributes {stable_mosaic.version = 11 : i64} {
  func.func @_kernel(%arg0: i32, %arg1: memref<8x128xf32, #tpu.memory_space<vmem>>, %arg2: memref<8x128xf32, #tpu.memory_space<vmem>>) attributes {dimension_semantics = [#tpu.dimension_semantics<arbitrary>], iteration_bounds = array<i64: 1>, scalar_prefetch = 0 : i64, scratch_operands = 0 : i64, tpu.core_type = #tpu.core_type<tc>, window_params = [{pipeline_mode = #tpu.pipeline_mode<synchronous>, transform_indices = @transform_0, window_bounds = array<i64: 8, 128>}, {pipeline_mode = #tpu.pipeline_mode<synchronous>, transform_indices = @transform_1, window_bounds = array<i64: 8, 128>}]} {
    %c0 = arith.constant 0 : index
    %c0_0 = arith.constant 0 : index
    %0 = vector.load %arg1[%c0, %c0_0] : memref<8x128xf32, #tpu.memory_space<vmem>>, vector<8x128xf32>
    %cst = arith.constant 1.000000e+00 : f32
    %1 = vector.broadcast %cst : f32 to vector<8x128xf32>
    %2 = arith.addf %0, %1 : vector<8x128xf32>
    %c0_1 = arith.constant 0 : index
    %c0_2 = arith.constant 0 : index
    %3 = vector.load %arg2[%c0_1, %c0_2] : memref<8x128xf32, #tpu.memory_space<vmem>>, vector<8x128xf32>
    tpu.vector_store %arg2[%c0_1, %c0_2], %2 {strides = array<i32>} : memref<8x128xf32, #tpu.memory_space<vmem>>, vector<8x128xf32>,
    return
  }
  func.func @transform_0(%arg0: i32) -> (i32, i32) {
    %c0_i32 = arith.constant 0 : i32
    %c0_i32_0 = arith.constant 0 : i32
    %c0_i32_1 = arith.constant 0 : i32
    return %c0_i32, %c0_i32_0 : i32, i32
  }
  func.func @transform_1(%arg0: i32) -> (i32, i32) {
    %c0_i32 = arith.constant 0 : i32
    %c0_i32_0 = arith.constant 0 : i32
    %c0_i32_1 = arith.constant 0 : i32
    return %c0_i32, %c0_i32_0 : i32, i32
  }
}

module attributes {stable_mosaic.version = 11 : i64} {
  func.func @_precomp_kernel(%arg0: i32, %arg1: memref<8x32xf32, #tpu.memory_space<vmem>>, %arg2: memref<32x32xf32, #tpu.memory_space<vmem>>, %arg3: memref<1x32xf32, #tpu.memory_space<vmem>>, %arg4: memref<8x32xf32, #tpu.memory_space<vmem>>) attributes {dimension_semantics = [#tpu.dimension_semantics<parallel>], iteration_bounds = array<i64: 2>, scalar_prefetch = 0 : i64, scratch_operands = 0 : i64, tpu.core_type = #tpu.core_type<tc>, window_params = [{transform_indices = @transform_0, window_bounds = array<i64: 8, 32>}, {pipeline_mode = #tpu.pipeline_mode<synchronous>, transform_indices = @transform_1, window_bounds = array<i64: 32, 32>}, {pipeline_mode = #tpu.pipeline_mode<synchronous>, transform_indices = @transform_2, window_bounds = array<i64: 1, 32>}, {transform_indices = @transform_3, window_bounds = array<i64: 8, 32>}]} {
    %c0 = arith.constant 0 : index
    %c0_0 = arith.constant 0 : index
    %0 = vector.load %arg1[%c0, %c0_0] : memref<8x32xf32, #tpu.memory_space<vmem>>, vector<8x32xf32>
    %c0_1 = arith.constant 0 : index
    %c0_2 = arith.constant 0 : index
    %1 = vector.load %arg2[%c0_1, %c0_2] : memref<32x32xf32, #tpu.memory_space<vmem>>, vector<32x32xf32>
    %cst = arith.constant dense<0.000000e+00> : vector<8x32xf32>
    %2 = tpu.matmul %0, %1, %cst {dimension_numbers = #tpu.dot_dimension_numbers<[1], [0], [0], [1], [0, 0, 1, 1], [], []>} : vector<8x32xf32>, vector<32x32xf32>, vector<8x32xf32> -> vector<8x32xf32>
    %c0_3 = arith.constant 0 : index
    %c0_4 = arith.constant 0 : index
    %3 = vector.load %arg3[%c0_3, %c0_4] : memref<1x32xf32, #tpu.memory_space<vmem>>, vector<1x32xf32>
    %4 = vector.broadcast %3 : vector<1x32xf32> to vector<8x32xf32>
    %5 = arith.addf %2, %4 : vector<8x32xf32>
    %cst_5 = arith.constant 1.000000e-01 : f32
    %6 = vector.broadcast %cst_5 : f32 to vector<8x32xf32>
    %7 = arith.mulf %6, %5 : vector<8x32xf32>
    %8 = arith.maximumf %5, %7 : vector<8x32xf32>
    %9 = arith.mulf %8, %8 : vector<8x32xf32>
    %cst_6 = arith.constant dense<0.000000e+00> : vector<8xf32>
    %10 = vector.multi_reduction <add>, %9, %cst_6 [1] : vector<8x32xf32> to vector<8xf32>
    %11 = vector.shape_cast %10 : vector<8xf32> to vector<8x1xf32>
    %12 = math.sqrt %11 : vector<8x1xf32>
    %cst_7 = arith.constant 9.99999993E-9 : f32
    %13 = vector.broadcast %cst_7 : f32 to vector<8x1xf32>
    %14 = arith.addf %12, %13 : vector<8x1xf32>
    %15 = tpu.reciprocal %14 : vector<8x1xf32> -> vector<8x1xf32>
    %16 = vector.broadcast %15 : vector<8x1xf32> to vector<8x32xf32>
    %17 = arith.mulf %8, %16 : vector<8x32xf32>
    %c0_8 = arith.constant 0 : index
    %c0_9 = arith.constant 0 : index
    %18 = vector.load %arg4[%c0_8, %c0_9] : memref<8x32xf32, #tpu.memory_space<vmem>>, vector<8x32xf32>
    tpu.vector_store %arg4[%c0_8, %c0_9], %17 {strides = array<i32>} : memref<8x32xf32, #tpu.memory_space<vmem>>, vector<8x32xf32>,
    return
  }
  func.func @transform_0(%arg0: i32) -> (i32, i32) {
    %c0_i32 = arith.constant 0 : i32
    %c0_i32_0 = arith.constant 0 : i32
    return %arg0, %c0_i32 : i32, i32
  }
  func.func @transform_1(%arg0: i32) -> (i32, i32) {
    %c0_i32 = arith.constant 0 : i32
    %c0_i32_0 = arith.constant 0 : i32
    %c0_i32_1 = arith.constant 0 : i32
    return %c0_i32, %c0_i32_0 : i32, i32
  }
  func.func @transform_2(%arg0: i32) -> (i32, i32) {
    %c0_i32 = arith.constant 0 : i32
    %c0_i32_0 = arith.constant 0 : i32
    %c0_i32_1 = arith.constant 0 : i32
    return %c0_i32, %c0_i32_0 : i32, i32
  }
  func.func @transform_3(%arg0: i32) -> (i32, i32) {
    %c0_i32 = arith.constant 0 : i32
    %c0_i32_0 = arith.constant 0 : i32
    return %arg0, %c0_i32 : i32, i32
  }
}

</mosaic_0001>

<bundles_post_ra>
// kernel: tpu_custom_call.1
= control target key start
LH: loop header
LB: loop body
LE: loop exit
PB: predicated region body
PF: predicated region fallthrough
CT: control target
= control target key end

     0   :  { %6 = vsyncpa [#allocation3], 0  ;;  %s103_s0 = inlined_call_operand.hbm [shape: f32[8,128], index: 0, kind: input, shape index: {}]   ;;  %s104_s1 = inlined_call_operand.hbm [shape: f32[8,128], index: 1, kind: output, shape index: {}]  }
   0x1   :  { %7 = vsyncpa [#allocation4], 0  ;;  %s85_s6 = smov [#allocation2]  }
   0x2   :  { %s14_s7 = sshll.u32 %s85_s6, 4  ;;  %s15_s7 = int_to_ptr.vmem [resolvable:$true] %s14_s7 }
   0x3   :  { %s49_s8 = scalar_lea.vmem %s15_s7, 128  ;;  %p54_p1 = scmp.lt.s32.totalorder %s15_s7, %s15_s7 }
   0x4   :  { %p50_p0 = scmp.ne.s32.totalorder %s15_s7, %s49_s8  ;;  %p55_p2 = scmp.lt.s32.totalorder %s49_s8, %s49_s8 }
   0x6   :  { %p56_p3 = por %p55_p2, %p54_p1 }
   0x8   :  { %p57_p4 = pnand %p56_p3, %p50_p0 }
   0xa   :  { %60 = shalt.err (!%p57_p4)
}
   0xb   :  { %17 = dma.hbm_to_vmem [thread:$0]  %s103_s0, 128, %s15_s7, [#allocation3]  }
   0xc   :  { %81 = dma.done.wait [#allocation3], 128  }
   0xd   :  { %82 = vsyncadd [#allocation3], 4294967168  ;;  %s86_s11 = smov [#allocation5]   ;;  %v21_v0 = vld [vmem:[#allocation2] sm:$0xff] }
   0xe   :  { %s30_s12 = sshll.u32 %s86_s11, 4  ;;  %v22_v1 = vadd.f32 1.0, %v21_v0  ;;  %s31_s12 = int_to_ptr.vmem [resolvable:$true] %s30_s12 }
   0xf   :  { %s61_s13 = scalar_lea.vmem %s31_s12, 128  ;;  %p66_p6 = scmp.lt.s32.totalorder %s31_s12, %s31_s12 }
  0x10   :  { %23 = vst [vmem:[#allocation5] sm:$0xff] %v22_v1  ;;  %p62_p5 = scmp.ne.s32.totalorder %s31_s12, %s61_s13  ;;  %p67_p7 = scmp.lt.s32.totalorder %s61_s13, %s61_s13 }
  0x12   :  { %p68_p8 = por %p67_p7, %p66_p6 }
  0x14   :  { %p69_p9 = pnand %p68_p8, %p62_p5 }
  0x16   :  { %72 = shalt.err (!%p69_p9)
}
  0x17   :  { %33 = dma.vmem_to_hbm [thread:$0]  %s31_s12, 128, %s104_s1, [#allocation4]  }
  0x18   :  { %83 = dma.done.wait [#allocation4], 128  }
  0x19   :  { %84 = vsyncadd [#allocation4], 4294967168 }
  0x1a   :  { %37 = vsyncpa [#allocation3], 1 }
  0x1b   :  { %38 = vsyncpa [#allocation4], 1 }

// kernel: simple_precomp_prepared.1
= control target key start
LH: loop header
LB: loop body
LE: loop exit
PB: predicated region body
PF: predicated region fallthrough
CT: control target
= control target key end

     0   :  { %8 = vsyncpa [#allocation3], 0  ;;  %s810_s0 = inlined_call_operand.hbm [shape: f32[16,32], index: 0, kind: input, shape index: {}]   ;;  %s811_s1 = inlined_call_operand.hbm [shape: f32[32,32], index: 1, kind: input, shape index: {}]   ;;  %s812_s2 = inlined_call_operand.vmem [shape: f32[1,32], index: 2, kind: input, shape index: {}]   ;;  %s813_s3 = inlined_call_operand.hbm [shape: f32[16,32], index: 3, kind: output, shape index: {}]  }
   0x1   :  { %10 = vsyncpa [#allocation3 + $0x1], 0 }
   0x2   :  { %11 = vsyncpa [#allocation6], 0 }
   0x3   :  { %12 = vsyncpa [#allocation4], 0 }
   0x4   :  { %14 = vsyncpa [#allocation4 + $0x1], 0  ;;  %s646_s12 = smov 0   ;;  %s648_s13 = smov 0  }
   0x5   :  { %s650_s14 = smov 0   ;;  %s652_s15 = smov 0  }
   0x6 LB: > { %s667_s16 = sadd.s32 4294967295, %s617_s15   ;;  %s398_s17 = sadd.s32 4294967294, %s617_s15   ;;  %s617_s15 = sphi %s652_s15, %s835_s15   ;;  %s613_s14 = sphi %s650_s14, %s834_s14   ;;  %s609_s13 = sphi %s648_s13, %s833_s13   ;;  %s605_s12 = sphi %s646_s12, %s832_s12  }
   0x7   : > { %p40_p0 = scmp.ne.s32.totalorder %s609_s13, %s605_s12  ;;  %p814_p1 = scmp.eq.s32.totalorder %s667_s16, 0 }
   0x8   : > { %p112_p3 = scmp.eq.s32.totalorder %s398_s17, 1  ;;  %p399_p5 = scmp.ge.s32.totalorder %s617_s15, 1 }
   0x9   : > { %p676_p4 = por %p814_p1, %p40_p0  ;;  %p119_p7 = scmp.lt.s32.totalorder %s617_s15, 3 }
   0xa   : > { %p681_p6 = por %p112_p3, %p40_p0  ;;  %s619_s21 = smov [#allocation5]  }
   0xb   : > { %s818_s18 = scalar_select %p676_p4, 1, 0 }
   0xc   : > { %s819_s19 = scalar_select %p681_p6, 1, 0 }
   0xd   : > { %p686_p8 = pnand %p399_p5, %p119_p7  ;;  %s131_s22 = sshll.u32 %s619_s21, 4  ;;  %s132_s22 = int_to_ptr.vmem [resolvable:$true] %s131_s22 }
   0xe   : > { %s700_s24 = sadd.s32 1, %s617_s15   ;;  %s27_s25 = sadd.s32 1, %s613_s14 }
   0xf   : > { %s820_s20 = scalar_select %p686_p8, 1, 0 }
  0x10   : > { %p438_p9 = pneg %p686_p8  ;;  %s24_s26 = ssub.s32 %s617_s15, %s700_s24 }
  0x11   : > { %s506_s27 = scalar_lea.vmem %s132_s22, 512  ;;  %p514_p5 = scmp.lt.s32.totalorder %s132_s22, %s132_s22 }
  0x12   : > { %p695_p11 = pnand %p438_p9, %p814_p1  ;;  %p507_p13 = scmp.ne.s32.totalorder %s132_s22, %s506_s27 }
  0x13   : > { %p515_p7 = scmp.lt.s32.totalorder %s506_s27, %s506_s27 }
  0x14   : > { %p497_p12 = pneg %p695_p11 }
  0x15   : > { %p516_p10 = por %p515_p7, %p514_p5 }
  0x16   : > { %p509_p0 = pnand %p507_p13, %p497_p12 }
  0x18   : > { %p510_p3 = pneg %p509_p0 }
  0x1a   : > { %p517_p2 = pnand %p516_p10, %p510_p3 }
  0x1c   : > { %520 = shalt.err (!%p517_p2)
}
  0x1d   : > { %s620_s28 = smov 128   ;;  %s621_s29 = smov 8  }
  0x1e   : > { %441 = dma.hbm_to_vmem [thread:$0]  (!%p695_p11), %s811_s1, 512, %s132_s22, [#allocation6], %s620_s28, %s620_s28, %s621_s29  }
  0x1f   : > { %p25_p9 = scmp.eq.s32.totalorder %s24_s26, 0  ;;  %p34_p12 = scmp.ne.s32.totalorder %s613_s14, %s609_s13 }
  0x20   : > { %p35_p10 = scmp.eq.s32.totalorder %s617_s15, 0  ;;  %p451_p2 = scmp.lt.s32.totalorder %s617_s15, 2 }
  0x21   : > { %s717_s5 = scalar_select %p25_p9, %s613_s14, %s27_s25  }
  0x22   : > { %p36_p13 = por %p35_p10, %p34_p12  ;;  %p822_p0 = scmp.eq.s32.totalorder %s667_s16, 1 }
  0x23   : > { %s148_s7 = sand.u32 1, %s613_s14   ;;  %s403_s8 = sshll.u32 %s617_s15, 7 }
  0x24   : > { %p721_p3 = por %p822_p0, %p34_p12  ;;  %s402_s9 = sshll.u32 %s148_s7, 3 }
  0x25   : > { %s730_s17 = scalar_lea.hbm %s810_s0, %s403_s8  ;;  %s152_s21 = scalar_lea.vmem [#allocation2], %s402_s9 }
  0x26   : > { %s823_s6 = scalar_select %p721_p3, 1, 0 }
  0x27   : > { %s159_s22 = sshll.u32 %s152_s21, 4  ;;  %p732_p11 = pnand %p451_p2, %p36_p13  ;;  %s160_s22 = int_to_ptr.vmem [resolvable:$true] %s159_s22 }
  0x28   : > { %s149_s25 = scalar_lea.sflag [#allocation3], %s148_s7  ;;  %s521_s26 = scalar_lea.hbm %s730_s17, 128 }
  0x29   : > { %p522_p5 = scmp.ne.s32.totalorder %s730_s17, %s521_s26  ;;  %p523_p7 = pneg %p732_p11 }
  0x2a   : > { %s526_s29 = scalar_lea.hbm %s810_s0, 256  ;;  %p527_p10 = scmp.lt.s32.totalorder %s730_s17, %s810_s0 }
  0x2b   : > { %p524_p9 = pnand %p523_p7, %p522_p5  ;;  %p528_p2 = scmp.lt.s32.totalorder %s526_s29, %s521_s26 }
  0x2d   : > { %p525_p12 = pneg %p524_p9  ;;  %p529_p13 = por %p528_p2, %p527_p10 }
  0x2f   : > { %p530_p0 = pnand %p529_p13, %p525_p12 }
  0x31   : > { %533 = shalt.err (!%p530_p0)
}
  0x32   : > { %s534_s8 = scalar_lea.vmem %s160_s22, 128  ;;  %s622_s7 = smov [#allocation2]  }
  0x33   : > { %p535_p1 = scmp.ne.s32.totalorder %s160_s22, %s534_s8  ;;  %s539_s9 = sshll.u32 %s622_s7, 4  ;;  %s540_s9 = int_to_ptr.vmem [resolvable:$false] %s539_s9 }
  0x34   : > { %s541_s10 = scalar_lea.vmem %s540_s9, 256  ;;  %p542_p5 = scmp.lt.s32.totalorder %s160_s22, %s540_s9 }
  0x35   : > { %p537_p6 = pnand %p535_p1, %p523_p7  ;;  %p543_p9 = scmp.lt.s32.totalorder %s541_s10, %s534_s8 }
  0x37   : > { %p538_p3 = pneg %p537_p6  ;;  %p544_p4 = por %p543_p9, %p542_p5 }
  0x39   : > { %p545_p8 = pnand %p544_p4, %p538_p3 }
  0x3b   : > { %548 = shalt.err (!%p545_p8)
}
  0x3c   : > { %445 = dma.hbm_to_vmem [thread:$0]  (!%p732_p11), %s730_s17, 128, %s160_s22, %s149_s25  }
  0x3d   : > { %p825_p12 = scmp.ne.s32.totalorder %s820_s20, 0 }
  0x3e   : > { %s753_s11 = sand.u32 (!%p825_p12), 1, %s609_s13   ;;  %p826_p1 = scmp.ne.s32.totalorder (!%p825_p12), %s818_s18, 0 }
  0x3f   : > { %168 = sbr.rel (%p825_p12) target bundleno = 470 (0x1d6), region = 32  ;;  %s405_s21 = sshll.u32 (!%p825_p12), %s753_s11, 3 }
  0x40   : > { %s171_s26 = scalar_lea.sflag (!%p825_p12), [#allocation3], %s753_s11  ;;  %s174_s27 = scalar_lea.vmem (!%p825_p12), [#allocation2], %s405_s21 }
  0x44   : > { %592 = dma.done.wait (%p826_p1), %s171_s26, 128  }
  0x45   : > { %594 = vsyncadd (%p826_p1), %s171_s26, 4294967168  ;;  %p827_p4 = scmp.eq.s32.totalorder %s667_s16, 0 }
  0x47   : > { %596 = dma.done.wait (%p827_p4), [#allocation6], 512   ;;  %p828_p6 = pmov %p827_p4 }
  0x48   : > { %v623_v0 = vmov 0.0   ;;  %vm624_vm0 = vmmov 0   ;;  %v205_v1 = vld [vmem:[#allocation5 + $0x18] sm:$0xff]  ;;  %v204_v2 = vld [vmem:[#allocation5 + $0x10] sm:$0xff]  ;;  %v203_v3 = vld [vmem:[#allocation5 + $0x8] sm:$0xff]  ;;  %vm213_vm1 = vcmask 261120  }
  0x49   : > { %598 = vsyncadd (%p828_p6), [#allocation6], 4294966784  ;;  %419 = vmatprep.subr.mxu0 %v623_v0  ;;  %427 = vmatprep.mubr.msk.f32.mxu0 %vm624_vm0, %v623_v0  ;;  %v202_v4 = vld [vmem:[#allocation5] sm:$0xff]  ;;  %v201_v5 = vld [vmem:[%s174_s27] sm:$0xff]  ;;  %s411_s17 = sshll.u32 %s667_s16, 7  ;;  %s200_s22 = scalar_lea.vmem [#allocation7], %s405_s21 }
  0x4a   : > { %420 = vmatpush3.msra.mxu0 %v205_v1  ;;  %v408_v6 = vld [vmem:[%s812_s2] ss:$0 sm:$0xff]  ;;  %s318_s23 = sshll.u32 %s200_s22, 4  ;;  %s316_s29 = scalar_lea.hbm %s813_s3, %s411_s17  ;;  %s319_s23 = int_to_ptr.vmem [resolvable:$true] %s318_s23 }
  0x4b   : > { %421 = vmatprep.subr.mxu0 %v623_v0  ;;  %s305_s30 = scalar_lea.sflag [#allocation4], %s753_s11  ;;  %s549_s4 = scalar_lea.vmem %s319_s23, 128 }
  0x4c   : > { %422 = vmatpush3.msra.mxu0 %v204_v2  ;;  %p550_p8 = scmp.ne.s32.totalorder %s319_s23, %s549_s4  ;;  %p829_p3 = scmp.ne.s32.totalorder %s823_s6, 0 }
  0x4d   : > { %423 = vmatprep.subr.mxu0 %v623_v0  ;;  %s625_s8 = smov [#allocation7]  }
  0x4e   : > { %424 = vmatpush3.msra.mxu0 %v203_v3  ;;  %p551_p11 = pnand %p550_p8, %p829_p3  ;;  %s553_s16 = sshll.u32 %s625_s8, 4  ;;  %s554_s16 = int_to_ptr.vmem [resolvable:$false] %s553_s16 }
  0x4f   : > { %425 = vmatprep.subr.mxu0 %v623_v0  ;;  %s555_s7 = scalar_lea.vmem %s554_s16, 256  ;;  %p556_p10 = scmp.lt.s32.totalorder %s319_s23, %s554_s16 }
  0x50   : > { %426 = vmatpush3.msra.mxu0 %v202_v4  ;;  %p552_p7 = pneg %p551_p11  ;;  %p557_p2 = scmp.lt.s32.totalorder %s555_s7, %s549_s4 }
  0x51   : > { %428 = vmatmul.mubr.msk.f32.vlgmr.msra.gmra.mxu0 %vm213_vm1, %v201_v5 }
  0x52   : > { %p558_p13 = por %p557_p2, %p556_p10 }
  0x54   : > { %p559_p0 = pnand %p558_p13, %p552_p7 }
 0x111   : > { %v283_v7 = vpop.f32.mrf.mxu0 }
 0x112   : > { %v284_v8 = vadd.f32 %v408_v6, %v283_v7 }
 0x113   : > { %v429_v9 = vpop.f32.mrf.mxu0 }
 0x114   : > { %v287_v10 = vmul.f32 0.1, %v284_v8 }
 0x116   : > { %v288_v11 = vmax.f32 %v284_v8, %v287_v10 }
 0x118   : > { %v289_v12 = vmul.f32 %v288_v11, %v288_v11 }
 0x11a   : > { %v290_v13 = vsel %vm213_vm1, %v289_v12, 0.0 }
 0x11b   : > { %291 = vadd.xlane.f32.xlu0 %v290_v13 }
 0x1a4   : > { %v292_v14 = vpop.xlane.xlu0 %291 }
 0x1a5   : > { %491 = vrsqrt.f32 %v292_v14  ;;  %vm295_vm2 = vcmp.eq.f32.partialorder %v292_v14, inf  ;;  %v298_v17 = vand.u32 2147483648, %v292_v14  ;;  %vm297_vm3 = vcmp.eq.f32.partialorder %v292_v14, 0.0 }
 0x1b2   : > { %v492_v15 = vpop.eup %491 }
 0x1b3   : > { %v294_v16 = vmul.f32 %v492_v15, %v292_v14 }
 0x1b5   : > { %v296_v18 = vsel %vm295_vm2, %v292_v14, %v294_v16 }
 0x1b6   : > { %v299_v19 = vsel %vm297_vm3, %v298_v17, %v296_v18 }
 0x1b7   : > { %v300_v20 = vadd.f32 1e-08, %v299_v19 }
 0x1b9   : > { %493 = vrcp.f32 %v300_v20 }
 0x1c6   : > { %v494_v21 = vpop.eup %493 }
 0x1c7   : > { %v302_v22 = vmul.f32 %v494_v21, %v288_v11 }
 0x1c9   : > { %303 = vst.msk [vmem:[%s200_s22] sm:$0xff] %vm213_vm1, %v302_v22 }
 0x1ca   : > { %562 = shalt.err (!%p559_p0)
}
 0x1cb   : > { %s563_s9 = scalar_lea.hbm %s316_s29, 128  ;;  %s567_s21 = scalar_lea.hbm %s813_s3, 256 }
 0x1cc   : > { %p564_p5 = scmp.ne.s32.totalorder %s316_s29, %s563_s9  ;;  %p568_p1 = scmp.lt.s32.totalorder %s316_s29, %s813_s3 }
 0x1cd   : > { %p569_p4 = scmp.lt.s32.totalorder %s567_s21, %s563_s9 }
 0x1ce   : > { %p565_p9 = pnand %p564_p5, %p829_p3 }
 0x1cf   : > { %p570_p6 = por %p569_p4, %p568_p1 }
 0x1d0   : > { %p566_p12 = pneg %p565_p9 }
 0x1d2   : > { %p571_p8 = pnand %p570_p6, %p566_p12 }
 0x1d4   : > { %574 = shalt.err (!%p571_p8)
}
 0x1d5   : > { %436 = dma.vmem_to_hbm [thread:$0]  (%p829_p3), %s319_s23, 128, %s316_s29, %s305_s30  }
 0x1d6 PF: > { %s330_s18 = sand.u32 1, %s605_s12   ;;  %p830_p11 = scmp.ne.s32.totalorder %s819_s19, 0 }
 0x1d7   : > { %p831_p7 = scmp.ge.s32.totalorder %s617_s15, 2  ;;  %s331_s20 = scalar_lea.sflag [#allocation4], %s330_s18 }
 0x1d9   : > { %p447_p10 = pnand %p831_p7, %p830_p11 }
 0x1db   : > { %p448_p2 = pneg %p447_p10 }
 0x1dd   : > { %600 = dma.done.wait (%p448_p2), %s331_s20, 128  }
 0x1de   : > { %602 = vsyncadd (%p448_p2), %s331_s20, 4294967168  ;;  %p17_p13 = scmp.ge.s32.totalorder %s700_s24, 4   ;;  %s832_s12 = smov %s609_s13 }
 0x1df   : > { %s833_s13 = smov %s613_s14  ;;  %s834_s14 = smov %s717_s5 }
 0x1e0   : > { %s835_s15 = smov %s700_s24  ;;  %19 = sbr.rel (!%p17_p13) target bundleno = 6 (0x6), region = 81 }
 0x1e5   :  { %336 = vsyncpa [#allocation3], 1 }
 0x1e6   :  { %338 = vsyncpa [#allocation3 + $0x1], 1 }
 0x1e7   :  { %339 = vsyncpa [#allocation6], 1 }
 0x1e8   :  { %340 = vsyncpa [#allocation4], 1 }
 0x1e9   :  { %342 = vsyncpa [#allocation4 + $0x1], 1 }

</bundles_post_ra>
